<compile_context>
chip_gen: v7x
topology: tpu7x:2x2x1
jax: 0.10.0
libtpu: 0.0.40
codegen_flags: <defaults>
</compile_context>

<pallas_src>
import functools

import jax
import jax.numpy as jnp
from jax.experimental import pallas as pl
from jax.experimental.pallas import tpu as pltpu

NODE_TYPES = ("user", "item")
EDGE_TYPES = (("user", "buys", "item"),)   # metadata[1]

LANE = 128        # channel padding target (lane axis)
NODE_TILE = 256   # row / K tile target for node and edge axes


# ----------------------------- padding helpers ------------------------------

def _round_up(n, m):
    return ((n + m - 1) // m) * m


def _pad_and_tile(n, target=NODE_TILE):
    """Return (padded size, tile) with tile dividing the padded size (sublane aligned)."""
    if n <= target:
        p = _round_up(n, 8)
        return p, p
    p = _round_up(n, target)
    return p, target


def _pad2(x, rows, cols):
    return jnp.pad(x, ((0, rows - x.shape[0]), (0, cols - x.shape[1])))


# ----------------------------- Pallas kernels -------------------------------

def _gru_cell(x, h, wih, whh, bih, bhh):
    """PyTorch GRUCell semantics; gate width == padded channel width (lane aligned)."""
    c = x.shape[1]
    gi = jnp.dot(x.astype(jnp.bfloat16), wih.astype(jnp.bfloat16),
                 preferred_element_type=jnp.float32) + bih
    gh = jnp.dot(h.astype(jnp.bfloat16), whh.astype(jnp.bfloat16),
                 preferred_element_type=jnp.float32) + bhh
    r = jax.nn.sigmoid(gi[:, 0:c] + gh[:, 0:c])
    z = jax.nn.sigmoid(gi[:, c:2 * c] + gh[:, c:2 * c])
    n = jnp.tanh(gi[:, 2 * c:3 * c] + r * gh[:, 2 * c:3 * c])
    return (1.0 - z) * n + z * h


def _item_layer_kernel(*refs, do_gru):
    """Fused item path: (A_mean @ X_src) @ W + b, then optional GRU update.

    Grid = (dst-row tiles, src/K tiles). The K axis accumulates A@X into an f32
    VMEM scratch; the linear (+ GRU) runs once on the last K step.
    """
    if do_gru:
        (a_ref, x_ref, w_ref, b_ref, h_ref, wih_ref, whh_ref, bih_ref, bhh_ref,
         out_ref, cur_ref, acc_ref) = refs
    else:
        a_ref, x_ref, w_ref, b_ref, out_ref, acc_ref = refs

    @pl.when(pl.program_id(1) == 0)
    def _():
        acc_ref[...] = jnp.zeros_like(acc_ref)

    acc_ref[...] += jnp.dot(a_ref[...].astype(jnp.bfloat16),
                            x_ref[...].astype(jnp.bfloat16),
                            preferred_element_type=jnp.float32)

    @pl.when(pl.program_id(1) == pl.num_programs(1) - 1)
    def _():
        out = jnp.dot(acc_ref[...].astype(jnp.bfloat16),
                      w_ref[...].astype(jnp.bfloat16),
                      preferred_element_type=jnp.float32) + b_ref[...]
        out_ref[...] = out
        if do_gru:
            cur_ref[...] = _gru_cell(out, h_ref[...], wih_ref[...], whh_ref[...],
                                     bih_ref[...], bhh_ref[...])


def _user_layer_kernel(*refs, do_gru):
    """Fused user path: projuser Linear, then optional GRU update."""
    if do_gru:
        (x_ref, w_ref, b_ref, h_ref, wih_ref, whh_ref, bih_ref, bhh_ref,
         out_ref, cur_ref) = refs
    else:
        x_ref, w_ref, b_ref, out_ref = refs

    out = jnp.dot(x_ref[...].astype(jnp.bfloat16), w_ref[...].astype(jnp.bfloat16),
                  preferred_element_type=jnp.float32) + b_ref[...]
    out_ref[...] = out
    if do_gru:
        cur_ref[...] = _gru_cell(out, h_ref[...], wih_ref[...], whh_ref[...],
                                 bih_ref[...], bhh_ref[...])


def _link_kernel(hs_ref, hd_ref, wv_ref, bsum_ref, o_ref):
    """score = sum(post(h_src*h_dst), -1) == (h_src*h_dst) . w_vec + b_sum."""
    h = hs_ref[...] * hd_ref[...]
    s = jnp.sum(h * wv_ref[...], axis=-1, keepdims=True) + bsum_ref[0]
    o_ref[...] = jnp.broadcast_to(s, o_ref.shape)   # lane-dense (unmasked) store


# ----------------------------- kernel wrappers -------------------------------

def item_layer(a_pad, x_src_pad, lin, gru=None, h_prev=None, *, tm, tk):
    """a_pad: (Ni_p, Nu_p) row-normalized adjacency; x_src_pad: (Nu_p, Cin_p).

    Returns (out, cur): conv output and GRU-updated state (== out when gru is None).
    """
    ni_p, nu_p = a_pad.shape
    cin_p = x_src_pad.shape[1]
    cout_p = lin["w"].shape[1]
    do_gru = gru is not None
    grid = (ni_p // tm, nu_p // tk)

    in_specs = [
        pl.BlockSpec((tm, tk), lambda i, k: (i, k)),
        pl.BlockSpec((tk, cin_p), lambda i, k: (k, 0)),
        pl.BlockSpec((cin_p, cout_p), lambda i, k: (0, 0)),
        pl.BlockSpec((1, cout_p), lambda i, k: (0, 0)),
    ]
    args = [a_pad, x_src_pad, lin["w"], lin["b"]]
    out_spec_row = pl.BlockSpec((tm, cout_p), lambda i, k: (i, 0))
    if do_gru:
        in_specs += [
            pl.BlockSpec((tm, cout_p), lambda i, k: (i, 0)),
            pl.BlockSpec((cout_p, 3 * cout_p), lambda i, k: (0, 0)),
            pl.BlockSpec((cout_p, 3 * cout_p), lambda i, k: (0, 0)),
            pl.BlockSpec((1, 3 * cout_p), lambda i, k: (0, 0)),
            pl.BlockSpec((1, 3 * cout_p), lambda i, k: (0, 0)),
        ]
        args += [h_prev, gru["wih"], gru["whh"], gru["bih"], gru["bhh"]]
        out_shape = (jax.ShapeDtypeStruct((ni_p, cout_p), jnp.float32),
                     jax.ShapeDtypeStruct((ni_p, cout_p), jnp.float32))
        out_specs = (out_spec_row, out_spec_row)
    else:
        out_shape = jax.ShapeDtypeStruct((ni_p, cout_p), jnp.float32)
        out_specs = out_spec_row

    res = pl.pallas_call(
        functools.partial(_item_layer_kernel, do_gru=do_gru),
        out_shape=out_shape,
        grid=grid,
        in_specs=in_specs,
        out_specs=out_specs,
        scratch_shapes=[pltpu.VMEM((tm, cin_p), jnp.float32)],
        compiler_params=pltpu.CompilerParams(
            dimension_semantics=("parallel", "arbitrary")),
    )(*args)
    return res if do_gru else (res, res)


def user_layer(x_pad, lin, gru=None, h_prev=None, *, tm):
    n_p, cin_p = x_pad.shape
    cout_p = lin["w"].shape[1]
    do_gru = gru is not None
    grid = (n_p // tm,)

    in_specs = [
        pl.BlockSpec((tm, cin_p), lambda i: (i, 0)),
        pl.BlockSpec((cin_p, cout_p), lambda i: (0, 0)),
        pl.BlockSpec((1, cout_p), lambda i: (0, 0)),
    ]
    args = [x_pad, lin["w"], lin["b"]]
    out_spec_row = pl.BlockSpec((tm, cout_p), lambda i: (i, 0))
    if do_gru:
        in_specs += [
            pl.BlockSpec((tm, cout_p), lambda i: (i, 0)),
            pl.BlockSpec((cout_p, 3 * cout_p), lambda i: (0, 0)),
            pl.BlockSpec((cout_p, 3 * cout_p), lambda i: (0, 0)),
            pl.BlockSpec((1, 3 * cout_p), lambda i: (0, 0)),
            pl.BlockSpec((1, 3 * cout_p), lambda i: (0, 0)),
        ]
        args += [h_prev, gru["wih"], gru["whh"], gru["bih"], gru["bhh"]]
        out_shape = (jax.ShapeDtypeStruct((n_p, cout_p), jnp.float32),
                     jax.ShapeDtypeStruct((n_p, cout_p), jnp.float32))
        out_specs = (out_spec_row, out_spec_row)
    else:
        out_shape = jax.ShapeDtypeStruct((n_p, cout_p), jnp.float32)
        out_specs = out_spec_row

    res = pl.pallas_call(
        functools.partial(_user_layer_kernel, do_gru=do_gru),
        out_shape=out_shape,
        grid=grid,
        in_specs=in_specs,
        out_specs=out_specs,
        compiler_params=pltpu.CompilerParams(dimension_semantics=("parallel",)),
    )(*args)
    return res if do_gru else (res, res)


def link_predict(h_src_pad, h_dst_pad, w_vec, b_sum, n_edges, *, te):
    e_p, c_p = h_src_pad.shape
    out = pl.pallas_call(
        _link_kernel,
        out_shape=jax.ShapeDtypeStruct((e_p, LANE), jnp.float32),
        grid=(e_p // te,),
        in_specs=[
            pl.BlockSpec((te, c_p), lambda i: (i, 0)),
            pl.BlockSpec((te, c_p), lambda i: (i, 0)),
            pl.BlockSpec((1, c_p), lambda i: (0, 0)),
            pl.BlockSpec(memory_space=pltpu.MemorySpace.SMEM),
        ],
        out_specs=pl.BlockSpec((te, LANE), lambda i: (i, 0)),
        compiler_params=pltpu.CompilerParams(dimension_semantics=("parallel",)),
    )(h_src_pad, h_dst_pad, w_vec, b_sum)
    return out[:n_edges, 0]


# ----------------------------- JAX glue --------------------------------------

def build_mean_adj(edge_index, n_src_pad, n_dst_pad):
    """Dense row-normalized adjacency A[dst, src] (mean aggregation); padded rows/cols are 0."""
    src, dst = edge_index[0], edge_index[1]
    a = jnp.zeros((n_dst_pad, n_src_pad), jnp.float32).at[dst, src].add(1.0)
    deg = jnp.maximum(a.sum(axis=1, keepdims=True), 1.0)
    return a / deg


def _init_linear(key, din, dout, scale=0.1):
    kw, kb = jax.random.split(key)
    return {"w": scale * jax.random.normal(kw, (din, dout), jnp.float32),
            "b": scale * jax.random.normal(kb, (1, dout), jnp.float32)}


def _init_gru(key, c, scale=0.1):
    k1, k2, k3, k4 = jax.random.split(key, 4)
    return {"wih": scale * jax.random.normal(k1, (c, 3 * c), jnp.float32),
            "whh": scale * jax.random.normal(k2, (c, 3 * c), jnp.float32),
            "bih": scale * jax.random.normal(k3, (1, 3 * c), jnp.float32),
            "bhh": scale * jax.random.normal(k4, (1, 3 * c), jnp.float32)}


def init_params(key, in_channels, h1, h2):
    keys = jax.random.split(key, 12)
    et = EDGE_TYPES[0]
    return {
        "conv1": {et: _init_linear(keys[0], in_channels[et[0]], h1)},
        "projuser1": _init_linear(keys[1], in_channels["user"], h1),
        "update1": {"user": _init_gru(keys[2], h1), "item": _init_gru(keys[3], h1)},
        "conv2": {et: _init_linear(keys[4], h1, h2)},
        "projuser2": _init_linear(keys[5], h1, h2),
        "update2": {"user": _init_gru(keys[6], h2), "item": _init_gru(keys[7], h2)},
        "post": _init_linear(keys[8], h2, 2),
        # SemanticAttention params omitted: single relation per node type => exact identity.
    }


def _pad_linear(p, din_p, dout_p):
    return {"w": _pad2(p["w"], din_p, dout_p), "b": _pad2(p["b"], 1, dout_p)}


def _pad_gru(p, c, c_p):
    # Pad each gate block [r | z | n] separately so gates stay lane-aligned at width c_p.
    def pad_gates(m, rows_p):
        return jnp.concatenate(
            [_pad2(m[:, i * c:(i + 1) * c], rows_p, c_p) for i in range(3)], axis=1)
    return {"wih": pad_gates(p["wih"], c_p), "whh": pad_gates(p["whh"], c_p),
            "bih": pad_gates(p["bih"], 1), "bhh": pad_gates(p["bhh"], 1)}


def prepare_params(params, in_channels, h1, h2):
    """Zero-pad all parameters to 128-lane multiples; pre-reduce the link head weights."""
    et = EDGE_TYPES[0]
    cin_p = _round_up(in_channels["user"], LANE)
    c1_p = _round_up(h1, LANE)
    c2_p = _round_up(h2, LANE)
    return {
        "dims": {"h1": h1, "h2": h2, "cin_p": cin_p, "c1_p": c1_p, "c2_p": c2_p},
        "conv1": _pad_linear(params["conv1"][et], cin_p, c1_p),
        "projuser1": _pad_linear(params["projuser1"], cin_p, c1_p),
        "update1": {nt: _pad_gru(params["update1"][nt], h1, c1_p) for nt in NODE_TYPES},
        "conv2": _pad_linear(params["conv2"][et], c1_p, c2_p),
        "projuser2": _pad_linear(params["projuser2"], c1_p, c2_p),
        "update2": {nt: _pad_gru(params["update2"][nt], h2, c2_p) for nt in NODE_TYPES},
        # sum(post(h), -1) == h @ post.w.sum(1) + post.b.sum()
        "post_wvec": _pad2(params["post"]["w"].sum(axis=1, keepdims=True).T, 1, c2_p),
        "post_bsum": params["post"]["b"].sum().reshape((1,)),
    }


def taobao_forward(pparams, x_dict, edge_index_dict, edge_label_index, snap,
                   past_out_dict_1=None, past_out_dict_2=None):
    dims = pparams["dims"]
    h1, h2 = dims["h1"], dims["h2"]
    cin_p, c1_p, c2_p = dims["cin_p"], dims["c1_p"], dims["c2_p"]

    n_user = x_dict["user"].shape[0]
    n_item = x_dict["item"].shape[0]
    nu_p, t_u = _pad_and_tile(n_user)
    ni_p, t_i = _pad_and_tile(n_item)

    # row-normalized adjacency, built ONCE per forward and reused by both conv layers
    et = EDGE_TYPES[0]
    a_pad = build_mean_adj(edge_index_dict[et], nu_p, ni_p)

    xu = _pad2(x_dict["user"], nu_p, cin_p)

    def past(d, nt, n_p, c_p):
        return None if d is None else _pad2(d[nt], n_p, c_p)

    # ----- layer 1: DurendalConv + projuser1 (+ identity SemanticAttention) + GRU update
    gru1 = pparams["update1"] if snap != 0 else {"user": None, "item": None}
    out1_item, cur1_item = item_layer(
        a_pad, xu, pparams["conv1"], gru=gru1["item"],
        h_prev=past(past_out_dict_1, "item", ni_p, c1_p), tm=t_i, tk=t_u)
    out1_user, cur1_user = user_layer(
        xu, pparams["projuser1"], gru=gru1["user"],
        h_prev=past(past_out_dict_1, "user", nu_p, c1_p), tm=t_u)

    # ----- layer 2 (consumes the pre-GRU layer-1 output, as in the reference module)
    gru2 = pparams["update2"] if snap != 0 else {"user": None, "item": None}
    out2_item, cur2_item = item_layer(
        a_pad, out1_user, pparams["conv2"], gru=gru2["item"],
        h_prev=past(past_out_dict_2, "item", ni_p, c2_p), tm=t_i, tk=t_u)
    out2_user, cur2_user = user_layer(
        out1_user, pparams["projuser2"], gru=gru2["user"],
        h_prev=past(past_out_dict_2, "user", nu_p, c2_p), tm=t_u)

    # ----- link prediction head (pre-GRU layer-2 embeddings, as in the reference module)
    n_label = edge_label_index.shape[1]
    e_p, t_e = _pad_and_tile(n_label)
    h_src = _pad2(out2_user[edge_label_index[0]], e_p, c2_p)
    h_dst = _pad2(out2_item[edge_label_index[1]], e_p, c2_p)
    h = link_predict(h_src, h_dst, pparams["post_wvec"], pparams["post_bsum"],
                     n_label, te=t_e)

    current_dict_1 = {"user": cur1_user[:n_user, :h1], "item": cur1_item[:n_item, :h1]}
    current_dict_2 = {"user": cur2_user[:n_user, :h2], "item": cur2_item[:n_item, :h2]}
    return h, current_dict_1, current_dict_2


# ----------------------------- main -------------------------------------------

if __name__ == "__main__":
    key = jax.random.PRNGKey(0)
    k_xu, k_xi, k_e, k_l, k_p = jax.random.split(key, 5)

    n_user, n_item = 12, 10
    in_channels = {"user": 8, "item": 8}
    hidden_conv_1, hidden_conv_2 = 32, 16
    n_edges, n_label = 24, 6

    x_dict = {
        "user": jax.random.normal(k_xu, (n_user, in_channels["user"]), jnp.float32),
        "item": jax.random.normal(k_xi, (n_item, in_channels["item"]), jnp.float32),
    }
    e_src = jax.random.randint(k_e, (n_edges,), 0, n_user, jnp.int32)
    e_dst = jax.random.randint(jax.random.fold_in(k_e, 1), (n_edges,), 0, n_item, jnp.int32)
    edge_index_dict = {EDGE_TYPES[0]: jnp.stack([e_src, e_dst], axis=0)}

    l_src = jax.random.randint(k_l, (n_label,), 0, n_user, jnp.int32)
    l_dst = jax.random.randint(jax.random.fold_in(k_l, 1), (n_label,), 0, n_item, jnp.int32)
    edge_label_index = jnp.stack([l_src, l_dst], axis=0)

    params = init_params(k_p, in_channels, hidden_conv_1, hidden_conv_2)
    pparams = prepare_params(params, in_channels, hidden_conv_1, hidden_conv_2)

    # snap 0: no temporal update (past dicts initialized here)
    h0, cur1, cur2 = taobao_forward(pparams, x_dict, edge_index_dict,
                                    edge_label_index, snap=0)
    # snap 1: GRU-based temporal update against the previous snapshot
    h1, cur1b, cur2b = taobao_forward(pparams, x_dict, edge_index_dict,
                                      edge_label_index, snap=1,
                                      past_out_dict_1=cur1, past_out_dict_2=cur2)

    jax.block_until_ready((h0, h1, cur1b["user"], cur2b["item"]))
    assert h0.shape == (n_label,) and h1.shape == (n_label,)
    assert cur1b["user"].shape == (n_user, hidden_conv_1)
    assert cur2b["item"].shape == (n_item, hidden_conv_2)
    print("KERNEL_OK")
</pallas_src>

<mosaic_0001>
module attributes {stable_mosaic.version = 11 : i64} {
  func.func @_item_layer_kernel(%arg0: i32, %arg1: i32, %arg2: memref<16x16xf32, #tpu.memory_space<vmem>>, %arg3: memref<16x128xf32, #tpu.memory_space<vmem>>, %arg4: memref<128x128xf32, #tpu.memory_space<vmem>>, %arg5: memref<1x128xf32, #tpu.memory_space<vmem>>, %arg6: memref<16x128xf32, #tpu.memory_space<vmem>>, %arg7: memref<16x128xf32, #tpu.memory_space<vmem>>) attributes {dimension_semantics = [#tpu.dimension_semantics<parallel>, #tpu.dimension_semantics<arbitrary>], iteration_bounds = array<i64: 1, 1>, scalar_prefetch = 0 : i64, scratch_operands = 1 : i64, tpu.core_type = #tpu.core_type<tc>, window_params = [{transform_indices = @transform_0, window_bounds = array<i64: 16, 16>}, {transform_indices = @transform_1, window_bounds = array<i64: 16, 128>}, {pipeline_mode = #tpu.pipeline_mode<synchronous>, transform_indices = @transform_2, window_bounds = array<i64: 128, 128>}, {pipeline_mode = #tpu.pipeline_mode<synchronous>, transform_indices = @transform_3, window_bounds = array<i64: 1, 128>}, {transform_indices = @transform_4, window_bounds = array<i64: 16, 128>}]} {
    %c0_i32 = arith.constant 0 : i32
    %0 = arith.cmpi eq, %arg1, %c0_i32 : i32
    %1 = arith.extui %0 : i1 to i32
    %c0_i32_0 = arith.constant 0 : i32
    %2 = arith.cmpi ne, %1, %c0_i32_0 : i32
    scf.if %2 {
      %cst_10 = arith.constant 0.000000e+00 : f32
      %14 = vector.broadcast %cst_10 : f32 to vector<16x128xf32>
      %c0_11 = arith.constant 0 : index
      %c0_12 = arith.constant 0 : index
      %15 = vector.load %arg7[%c0_11, %c0_12] : memref<16x128xf32, #tpu.memory_space<vmem>>, vector<16x128xf32>
      tpu.vector_store %arg7[%c0_11, %c0_12], %14 {strides = array<i32>} : memref<16x128xf32, #tpu.memory_space<vmem>>, vector<16x128xf32>,
    } else {
    }
    %c0 = arith.constant 0 : index
    %c0_1 = arith.constant 0 : index
    %3 = vector.load %arg7[%c0, %c0_1] : memref<16x128xf32, #tpu.memory_space<vmem>>, vector<16x128xf32>
    %c0_2 = arith.constant 0 : index
    %c0_3 = arith.constant 0 : index
    %4 = vector.load %arg2[%c0_2, %c0_3] : memref<16x16xf32, #tpu.memory_space<vmem>>, vector<16x16xf32>
    %5 = arith.truncf %4 : vector<16x16xf32> to vector<16x16xbf16>
    %c0_4 = arith.constant 0 : index
    %c0_5 = arith.constant 0 : index
    %6 = vector.load %arg3[%c0_4, %c0_5] : memref<16x128xf32, #tpu.memory_space<vmem>>, vector<16x128xf32>
    %7 = arith.truncf %6 : vector<16x128xf32> to vector<16x128xbf16>
    %cst = arith.constant dense<0.000000e+00> : vector<16x128xf32>
    %8 = tpu.matmul %5, %7, %cst {dimension_numbers = #tpu.dot_dimension_numbers<[1], [0], [0], [1], [0, 0, 1, 1], [], []>} : vector<16x16xbf16>, vector<16x128xbf16>, vector<16x128xf32> -> vector<16x128xf32>
    %9 = arith.addf %3, %8 : vector<16x128xf32>
    %c0_6 = arith.constant 0 : index
    %c0_7 = arith.constant 0 : index
    %10 = vector.load %arg7[%c0_6, %c0_7] : memref<16x128xf32, #tpu.memory_space<vmem>>, vector<16x128xf32>
    tpu.vector_store %arg7[%c0_6, %c0_7], %9 {strides = array<i32>} : memref<16x128xf32, #tpu.memory_space<vmem>>, vector<16x128xf32>,
    %c0_i32_8 = arith.constant 0 : i32
    %11 = arith.cmpi eq, %arg1, %c0_i32_8 : i32
    %12 = arith.extui %11 : i1 to i32
    %c0_i32_9 = arith.constant 0 : i32
    %13 = arith.cmpi ne, %12, %c0_i32_9 : i32
    scf.if %13 {
      %c0_10 = arith.constant 0 : index
      %c0_11 = arith.constant 0 : index
      %14 = vector.load %arg7[%c0_10, %c0_11] : memref<16x128xf32, #tpu.memory_space<vmem>>, vector<16x128xf32>
      %15 = arith.truncf %14 : vector<16x128xf32> to vector<16x128xbf16>
      %c0_12 = arith.constant 0 : index
      %c0_13 = arith.constant 0 : index
      %16 = vector.load %arg4[%c0_12, %c0_13] : memref<128x128xf32, #tpu.memory_space<vmem>>, vector<128x128xf32>
      %17 = arith.truncf %16 : vector<128x128xf32> to vector<128x128xbf16>
      %cst_14 = arith.constant dense<0.000000e+00> : vector<16x128xf32>
      %18 = tpu.matmul %15, %17, %cst_14 {dimension_numbers = #tpu.dot_dimension_numbers<[1], [0], [0], [1], [0, 0, 1, 1], [], []>} : vector<16x128xbf16>, vector<128x128xbf16>, vector<16x128xf32> -> vector<16x128xf32>
      %c0_15 = arith.constant 0 : index
      %c0_16 = arith.constant 0 : index
      %19 = vector.load %arg5[%c0_15, %c0_16] : memref<1x128xf32, #tpu.memory_space<vmem>>, vector<1x128xf32>
      %20 = vector.broadcast %19 : vector<1x128xf32> to vector<16x128xf32>
      %21 = arith.addf %18, %20 : vector<16x128xf32>
      %c0_17 = arith.constant 0 : index
      %c0_18 = arith.constant 0 : index
      %22 = vector.load %arg6[%c0_17, %c0_18] : memref<16x128xf32, #tpu.memory_space<vmem>>, vector<16x128xf32>
      tpu.vector_store %arg6[%c0_17, %c0_18], %21 {strides = array<i32>} : memref<16x128xf32, #tpu.memory_space<vmem>>, vector<16x128xf32>,
    } else {
    }
    return
  }
  func.func @transform_0(%arg0: i32, %arg1: i32) -> (i32, i32) {
    %c0_i32 = arith.constant 0 : i32
    return %arg0, %arg1 : i32, i32
  }
  func.func @transform_1(%arg0: i32, %arg1: i32) -> (i32, i32) {
    %c0_i32 = arith.constant 0 : i32
    %c0_i32_0 = arith.constant 0 : i32
    return %arg1, %c0_i32 : i32, i32
  }
  func.func @transform_2(%arg0: i32, %arg1: i32) -> (i32, i32) {
    %c0_i32 = arith.constant 0 : i32
    %c0_i32_0 = arith.constant 0 : i32
    %c0_i32_1 = arith.constant 0 : i32
    return %c0_i32, %c0_i32_0 : i32, i32
  }
  func.func @transform_3(%arg0: i32, %arg1: i32) -> (i32, i32) {
    %c0_i32 = arith.constant 0 : i32
    %c0_i32_0 = arith.constant 0 : i32
    %c0_i32_1 = arith.constant 0 : i32
    return %c0_i32, %c0_i32_0 : i32, i32
  }
  func.func @transform_4(%arg0: i32, %arg1: i32) -> (i32, i32) {
    %c0_i32 = arith.constant 0 : i32
    %c0_i32_0 = arith.constant 0 : i32
    return %arg0, %c0_i32 : i32, i32
  }
}

</mosaic_0001>

<bundles_post_ra>
// kernel: tpu_custom_call.1
= control target key start
LH: loop header
LB: loop body
LE: loop exit
PB: predicated region body
PF: predicated region fallthrough
CT: control target
= control target key end

     0   :  { %9 = vsyncpa [#allocation4], 0  ;;  %s465_s0 = inlined_call_operand.hbm [shape: f32[16,16], index: 0, kind: input, shape index: {}]   ;;  %s466_s1 = inlined_call_operand.hbm [shape: f32[16,128], index: 1, kind: input, shape index: {}]   ;;  %s467_s2 = inlined_call_operand.hbm [shape: f32[128,128], index: 2, kind: input, shape index: {}]   ;;  %s468_s3 = inlined_call_operand.vmem [shape: f32[1,128], index: 3, kind: input, shape index: {}]   ;;  %s469_s4 = inlined_call_operand.hbm [shape: f32[16,128], index: 4, kind: output, shape index: {}]  }
   0x1   :  { %10 = vsyncpa [#allocation7], 0 }
   0x2   :  { %11 = vsyncpa [#allocation5], 0  ;;  %s362_s15 = smov [#allocation6]   ;;  %s363_s17 = smov [#allocation3]  }
   0x3   :  { %s29_s16 = sshll.u32 %s362_s15, 4  ;;  %s17_s18 = sshll.u32 %s363_s17, 4  ;;  %s30_s16 = int_to_ptr.vmem [resolvable:$true] %s29_s16  ;;  %s395_s18 = int_to_ptr.vmem [resolvable:$true] %s17_s18 }
   0x4   :  { %s268_s21 = scalar_lea.hbm %s466_s1, 256 }
   0x5   :  { %p269_p0 = scmp.ne.s32.totalorder %s466_s1, %s268_s21  ;;  %p272_p1 = scmp.lt.u32.totalorder %s268_s21, %s466_s1 }
   0x7   :  { %p274_p2 = pnand %p272_p1, %p269_p0 }
   0x9   :  { %277 = shalt.err (!%p274_p2)
}
   0xa   :  { %s278_s26 = scalar_lea.vmem %s30_s16, 256  ;;  %p283_p4 = scmp.lt.s32.totalorder %s30_s16, %s30_s16 }
   0xb   :  { %p279_p3 = scmp.ne.s32.totalorder %s30_s16, %s278_s26  ;;  %p284_p5 = scmp.lt.s32.totalorder %s278_s26, %s278_s26 }
   0xd   :  { %p285_p6 = por %p284_p5, %p283_p4 }
   0xf   :  { %p286_p7 = pnand %p285_p6, %p279_p3 }
  0x11   :  { %289 = shalt.err (!%p286_p7)
}
  0x12   :  { %s364_s27 = smov 128   ;;  %s365_s28 = smov 8  }
  0x13   :  { %35 = dma.hbm_to_vmem [thread:$0]  %s466_s1, 256, %s30_s16, [#allocation7], %s364_s27, %s364_s27, %s365_s28  }
  0x14   :  { %s290_s7 = scalar_lea.hbm %s465_s0, 256 }
  0x15   :  { %p291_p8 = scmp.ne.s32.totalorder %s465_s0, %s290_s7  ;;  %p294_p9 = scmp.lt.u32.totalorder %s290_s7, %s465_s0 }
  0x17   :  { %p296_p10 = pnand %p294_p9, %p291_p8 }
  0x19   :  { %299 = shalt.err (!%p296_p10)
}
  0x1a   :  { %s300_s12 = scalar_lea.vmem %s395_s18, 256  ;;  %p305_p12 = scmp.lt.s32.totalorder %s395_s18, %s395_s18 }
  0x1b   :  { %p301_p11 = scmp.ne.s32.totalorder %s395_s18, %s300_s12  ;;  %p306_p13 = scmp.lt.s32.totalorder %s300_s12, %s300_s12 }
  0x1d   :  { %p307_p0 = por %p306_p13, %p305_p12 }
  0x1f   :  { %p308_p1 = pnand %p307_p0, %p301_p11 }
  0x21   :  { %311 = shalt.err (!%p308_p1)
}
  0x22   :  { %23 = dma.hbm_to_vmem [thread:$0]  %s465_s0, 256, %s395_s18, [#allocation4], %s364_s27, %s364_s27, %s365_s28  }
  0x23   :  { %s366_s14 = smov [#allocation8]   ;;  %s312_s19 = scalar_lea.hbm %s467_s2, 2048 }
  0x24   :  { %s41_s15 = sshll.u32 %s366_s14, 4  ;;  %p313_p2 = scmp.ne.s32.totalorder %s467_s2, %s312_s19  ;;  %s42_s15 = int_to_ptr.vmem [resolvable:$true] %s41_s15 }
  0x25   :  { %p316_p3 = scmp.lt.u32.totalorder %s312_s19, %s467_s2 }
  0x27   :  { %p318_p4 = pnand %p316_p3, %p313_p2 }
  0x29   :  { %321 = shalt.err (!%p318_p4)
}
  0x2a   :  { %s322_s24 = scalar_lea.vmem %s42_s15, 2048  ;;  %p327_p6 = scmp.lt.s32.totalorder %s42_s15, %s42_s15 }
  0x2b   :  { %p323_p5 = scmp.ne.s32.totalorder %s42_s15, %s322_s24  ;;  %p328_p7 = scmp.lt.s32.totalorder %s322_s24, %s322_s24 }
  0x2d   :  { %p329_p8 = por %p328_p7, %p327_p6 }
  0x2f   :  { %p330_p9 = pnand %p329_p8, %p323_p5 }
  0x31   :  { %333 = shalt.err (!%p330_p9)
}
  0x32   :  { %47 = dma.hbm_to_vmem [thread:$0]  %s467_s2, 2048, %s42_s15, [#allocation7], %s364_s27, %s364_s27, %s365_s28  }
  0x33   :  { %356 = dma.done.wait [#allocation4], 256  }
  0x34   :  { %357 = vsyncadd [#allocation4], 4294967040 }
  0x35   :  { %358 = dma.done.wait [#allocation7], 2304  }
  0x36   :  { %359 = vsyncadd [#allocation7], 4294964992  ;;  %v367_v0 = vmov 0.0   ;;  %vm368_vm0 = vmmov 0   ;;  %v71_v1 = vld [vmem:[#allocation6] sm:$0xff]  ;;  %v72_v2 = vld [vmem:[#allocation6 + $0x8] sm:$0xff] }
  0x37   :  { %234 = vmatprep.subr.bf16.mxu0 %v367_v0  ;;  %236 = vmatprep.mubr.msk.bf16.mxu0 %vm368_vm0, %v367_v0  ;;  %v68_v3 = vld [vmem:[#allocation3] sm:$0xff]  ;;  %v73_v4 = vpack.c.bf16 %v72_v2, %v71_v1  ;;  %v69_v5 = vld [vmem:[#allocation3 + $0x8] sm:$0xff]  ;;  %v131_v10 = vld [vmem:[#allocation8 + $0x10] sm:$0xff]  ;;  %vm74_vm1 = vcmask 130048   ;;  %s369_s26 = smov [#allocation9]  }
  0x38   :  { %240 = vmatprep.subr.bf16.mxu1 %v367_v0  ;;  %256 = vmatprep.mubr.msk.bf16.mxu1 %vm368_vm0, %v367_v0  ;;  %v129_v6 = vld [vmem:[#allocation8] sm:$0xff]  ;;  %v130_v7 = vld [vmem:[#allocation8 + $0x8] sm:$0xff]  ;;  %v70_v8 = vpack.c.bf16 %v69_v5, %v68_v3  ;;  %v132_v11 = vld [vmem:[#allocation8 + $0x18] sm:$0xff]  ;;  %s208_s29 = sshll.u32 %s369_s26, 4  ;;  %s209_s29 = int_to_ptr.vmem [resolvable:$true] %s208_s29 }
  0x39   :  { %v145_v9 = vpack.c.bf16 %v130_v7, %v129_v6  ;;  %235 = vmatpush3.bf16.msra.mxu0 %v73_v4  ;;  %v146_v12 = vpack.c.bf16 %v132_v11, %v131_v10  ;;  %v133_v13 = vld [vmem:[#allocation8 + $0x20] sm:$0xff]  ;;  %v134_v14 = vld [vmem:[#allocation8 + $0x28] sm:$0xff]  ;;  %v135_v16 = vld [vmem:[#allocation8 + $0x30] sm:$0xff]  ;;  %s334_s30 = scalar_lea.vmem %s209_s29, 256  ;;  %p339_p11 = scmp.lt.s32.totalorder %s209_s29, %s209_s29 }
  0x3a   :  { %v147_v15 = vpack.c.bf16 %v134_v14, %v133_v13  ;;  %v136_v17 = vld [vmem:[#allocation8 + $0x38] sm:$0xff]  ;;  %v137_v19 = vld [vmem:[#allocation8 + $0x40] sm:$0xff]  ;;  %v138_v20 = vld [vmem:[#allocation8 + $0x48] sm:$0xff]  ;;  %p335_p10 = scmp.ne.s32.totalorder %s209_s29, %s334_s30  ;;  %p340_p12 = scmp.lt.s32.totalorder %s334_s30, %s334_s30 }
  0x3b   :  { %241 = vmatpush3.bf16.msra.mxu1 %v145_v9  ;;  %v148_v18 = vpack.c.bf16 %v136_v17, %v135_v16  ;;  %v149_v21 = vpack.c.bf16 %v138_v20, %v137_v19  ;;  %v139_v22 = vld [vmem:[#allocation8 + $0x50] sm:$0xff]  ;;  %v140_v23 = vld [vmem:[#allocation8 + $0x58] sm:$0xff]  ;;  %v141_v25 = vld [vmem:[#allocation8 + $0x60] sm:$0xff] }
  0x3c   :  { %242 = vmatprep.subr.bf16.mxu1 %v367_v0  ;;  %237 = vmatmul.mubr.msk.bf16.vlgmr.msra.gmra.mrb[0].mxu0 %vm74_vm1, %v70_v8  ;;  %v150_v24 = vpack.c.bf16 %v140_v23, %v139_v22  ;;  %v142_v26 = vld [vmem:[#allocation8 + $0x68] sm:$0xff]  ;;  %v143_v28 = vld [vmem:[#allocation8 + $0x70] sm:$0xff]  ;;  %v144_v29 = vld [vmem:[#allocation8 + $0x78] sm:$0xff]  ;;  %p341_p13 = por %p340_p12, %p339_p11 }
  0x3d   :  { %v151_v27 = vpack.c.bf16 %v142_v26, %v141_v25  ;;  %v152_v30 = vpack.c.bf16 %v144_v29, %v143_v28  ;;  %v222_v36 = vld [vmem:[%s468_s3] ss:$0 sm:$0xff] }
  0x3e   :  { %p342_p0 = pnand %p341_p13, %p335_p10 }
  0x3f   :  { %243 = vmatpush3.bf16.msra.mxu1 %v146_v12 }
  0x40   :  { %244 = vmatprep.subr.bf16.mxu1 %v367_v0 }
  0x43   :  { %245 = vmatpush3.bf16.msra.mxu1 %v147_v15 }
  0x44   :  { %246 = vmatprep.subr.bf16.mxu1 %v367_v0 }
  0x47   :  { %247 = vmatpush3.bf16.msra.mxu1 %v148_v18 }
  0x48   :  { %248 = vmatprep.subr.bf16.mxu1 %v367_v0 }
  0x4b   :  { %249 = vmatpush3.bf16.msra.mxu1 %v149_v21 }
  0x4c   :  { %250 = vmatprep.subr.bf16.mxu1 %v367_v0 }
  0x4f   :  { %251 = vmatpush3.bf16.msra.mxu1 %v150_v24 }
  0x50   :  { %252 = vmatprep.subr.bf16.mxu1 %v367_v0 }
  0x53   :  { %253 = vmatpush3.bf16.msra.mxu1 %v151_v27 }
  0x54   :  { %254 = vmatprep.subr.bf16.mxu1 %v367_v0 }
  0x57   :  { %255 = vmatpush3.bf16.msra.mxu1 %v152_v30 }
 0x10f   :  { %v112_v31 = vpop.f32.mrb[0].mxu0 }
 0x110   :  { %v238_v32 = vpop.f32.mrb[1].mxu0 }
 0x111   :  { %v115_v33 = vpop.f32.mrb[2].mxu0 }
 0x112   :  { %v128_v34 = vpack.c.bf16 %v115_v33, %v112_v31  ;;  %v239_v35 = vpop.f32.mrb[3].mxu0 }
 0x114   :  { %257 = vmatmul.mubr.bf16.vlgmr.msra.gmra.mrb[0].mxu1 %v128_v34 }
 0x1e7   :  { %v194_v37 = vpop.f32.mrb[0].mxu1 }
 0x1e8   :  { %v195_v38 = vadd.f32 %v222_v36, %v194_v37  ;;  %v258_v39 = vpop.f32.mrb[1].mxu1 }
 0x1e9   :  { %v197_v40 = vpop.f32.mrb[2].mxu1 }
 0x1ea   :  { %201 = vst [vmem:[#allocation9] sm:$0xff] %v195_v38  ;;  %v198_v41 = vadd.f32 %v222_v36, %v197_v40  ;;  %v259_v42 = vpop.f32.mrb[3].mxu1 }
 0x1ec   :  { %202 = vst [vmem:[#allocation9 + $0x8] sm:$0xff] %v198_v41 }
 0x1ed   :  { %345 = shalt.err (!%p342_p0)
}
 0x1ee   :  { %s346_s6 = scalar_lea.hbm %s469_s4, 256 }
 0x1ef   :  { %p347_p1 = scmp.ne.s32.totalorder %s469_s4, %s346_s6  ;;  %p350_p2 = scmp.lt.u32.totalorder %s346_s6, %s469_s4 }
 0x1f1   :  { %p352_p3 = pnand %p350_p2, %p347_p1 }
 0x1f3   :  { %355 = shalt.err (!%p352_p3)
}
 0x1f4   :  { %214 = dma.vmem_to_hbm [thread:$0]  %s209_s29, 256, %s469_s4, [#allocation5], %s364_s27, %s364_s27, %s365_s28  }
 0x1f5   :  { %360 = dma.done.wait [#allocation5], 256  }
 0x1f6   :  { %361 = vsyncadd [#allocation5], 4294967040 }
 0x1f7   :  { %218 = vsyncpa [#allocation4], 1 }
 0x1f8   :  { %219 = vsyncpa [#allocation7], 1 }
 0x1f9   :  { %220 = vsyncpa [#allocation5], 1 }

</bundles_post_ra>
